<compile_context>
chip_gen: v6e
topology: v6e:2x2x1
jax: 0.10.0
libtpu: 0.0.40
codegen_flags: <defaults>
</compile_context>

<pallas_src>
import functools

import jax
import jax.numpy as jnp
from jax.experimental import pallas as pl
from jax.experimental.pallas import tpu as pltpu


def _round_up(x, m):
    return (x + m - 1) // m * m


def qnet_kernel(x_ref, w1_ref, b1_ref, w2_ref, b2_ref, out_ref):
    # fc1: (tb, S) @ (S, H) -> f32 accumulate, bias add + ReLU in f32.
    x = x_ref[...]
    h = jnp.dot(x, w1_ref[...], preferred_element_type=jnp.float32)
    h = jnp.maximum(h + b1_ref[...], 0.0)
    # Cast the hidden activation to the storage dtype so the second dot is a
    # narrow x narrow MXU op in bf16 mode (no-op in f32 mode).
    h = h.astype(w2_ref.dtype)
    # fc2: (tb, H) @ (H, A) -> f32 accumulate, bias add in f32.
    q = jnp.dot(h, w2_ref[...], preferred_element_type=jnp.float32) + b2_ref[...]
    out_ref[...] = q.astype(out_ref.dtype)


@functools.partial(jax.jit, static_argnames=("block_b", "compute_dtype"))
def qnetwork_forward(state, w1, b1, w2, b2, *, block_b=8192,
                     compute_dtype=jnp.float32):
    """relu(state @ w1 + b1) @ w2 + b2.

    state: (B, S) f32.  w1: (S, H), b1: (1, H), w2: (H, A), b2: (1, A).
    compute_dtype: storage dtype for x/w1/w2 (use jnp.bfloat16 on v6e/v7x to
    halve the HBM read stream; accumulation/bias/ReLU stay f32).
    Returns (B, A) f32.
    """
    B, S = state.shape
    H = w1.shape[1]
    A = w2.shape[1]

    # Narrow storage for the matmul operands only; biases stay f32 so the
    # elementwise work is f32 (required on v5e, harmless elsewhere).
    x = state.astype(compute_dtype)
    w1c = w1.astype(compute_dtype)
    w2c = w2.astype(compute_dtype)

    # Batch tile: multiple of 8 sublanes (or the full batch when B < 8).
    if B < 8:
        tb = B                                   # full-dim block is always legal
    else:
        tb = min(block_b, _round_up(B, 8))
        # Give both v7x TensorCores work when the batch allows >= 2 steps.
        if pl.cdiv(B, tb) < 2:
            tb = _round_up(pl.cdiv(B, 2), 8)
    grid = (pl.cdiv(B, tb),)

    itemsize = jnp.dtype(compute_dtype).itemsize
    flops = 2 * B * S * H + 2 * B * H * A
    bytes_accessed = (B * S * itemsize + S * H * itemsize + H * 4
                      + H * A * itemsize + A * 4 + B * A * 4)

    out = pl.pallas_call(
        qnet_kernel,
        out_shape=jax.ShapeDtypeStruct((B, A), jnp.float32),
        grid_spec=pltpu.PrefetchScalarGridSpec(
            num_scalar_prefetch=0,
            grid=grid,
            in_specs=[
                # Activations: tiled over the batch grid, unpadded minor dim.
                pl.BlockSpec((tb, S), lambda i: (i, 0)),
                # Weights / biases: same block every grid step -> resident.
                pl.BlockSpec((S, H), lambda i: (0, 0)),
                pl.BlockSpec((1, H), lambda i: (0, 0)),
                pl.BlockSpec((H, A), lambda i: (0, 0)),
                pl.BlockSpec((1, A), lambda i: (0, 0)),
            ],
            out_specs=pl.BlockSpec((tb, A), lambda i: (i, 0)),
        ),
        compiler_params=pltpu.CompilerParams(
            # Batch-parallel grid: shards across the 2 TensorCores on v7x.
            dimension_semantics=("parallel",),
        ),
        cost_estimate=pl.CostEstimate(
            flops=flops, transcendentals=0, bytes_accessed=bytes_accessed
        ),
    )(x, w1c, b1, w2c, b2)

    return out


def init_params(key, state_size, action_size, hidden_size=64):
    """Deterministic init mimicking nn.Linear's U(-1/sqrt(fan_in), 1/sqrt(fan_in))."""
    k1, k2, k3, k4 = jax.random.split(key, 4)
    bound1 = 1.0 / jnp.sqrt(state_size)
    bound2 = 1.0 / jnp.sqrt(hidden_size)
    # Stored already transposed: (in, out).
    w1 = jax.random.uniform(k1, (state_size, hidden_size), jnp.float32, -bound1, bound1)
    b1 = jax.random.uniform(k2, (1, hidden_size), jnp.float32, -bound1, bound1)
    w2 = jax.random.uniform(k3, (hidden_size, action_size), jnp.float32, -bound2, bound2)
    b2 = jax.random.uniform(k4, (1, action_size), jnp.float32, -bound2, bound2)
    return w1, b1, w2, b2


if __name__ == "__main__":
    key = jax.random.PRNGKey(0)
    k_params, k_state = jax.random.split(key)

    batch = 8
    state_size = 16
    action_size = 4
    hidden_size = 64

    w1, b1, w2, b2 = init_params(k_params, state_size, action_size, hidden_size)
    state = jax.random.normal(k_state, (batch, state_size), jnp.float32)

    def ref_fwd(s):
        return jnp.maximum(s @ w1 + b1, 0.0) @ w2 + b2

    # 1) f32 path, exact parity with the PyTorch module.
    q_vals = qnetwork_forward(state, w1, b1, w2, b2)
    jax.block_until_ready(q_vals)
    assert q_vals.shape == (batch, action_size)
    assert jnp.allclose(q_vals, ref_fwd(state), atol=1e-5, rtol=1e-5)

    # 2) Ragged batch (exercises the cdiv grid + partial boundary block).
    state20 = jax.random.normal(jax.random.PRNGKey(1), (20, state_size), jnp.float32)
    q20 = qnetwork_forward(state20, w1, b1, w2, b2)
    jax.block_until_ready(q20)
    assert q20.shape == (20, action_size)
    assert jnp.allclose(q20, ref_fwd(state20), atol=1e-5, rtol=1e-5)

    # 3) bf16 storage path (the v6e/v7x bandwidth optimization), loose tolerance.
    q_bf16 = qnetwork_forward(state, w1, b1, w2, b2, compute_dtype=jnp.bfloat16)
    jax.block_until_ready(q_bf16)
    assert q_bf16.shape == (batch, action_size)
    assert jnp.allclose(q_bf16, ref_fwd(state), atol=1e-1, rtol=1e-1)

    print("KERNEL_OK")
</pallas_src>

<mosaic_0001>
module attributes {stable_mosaic.version = 11 : i64} {
  func.func @qnet_kernel(%arg0: i32, %arg1: memref<8x16xf32, #tpu.memory_space<vmem>>, %arg2: memref<16x64xf32, #tpu.memory_space<vmem>>, %arg3: memref<1x64xf32, #tpu.memory_space<vmem>>, %arg4: memref<64x4xf32, #tpu.memory_space<vmem>>, %arg5: memref<1x4xf32, #tpu.memory_space<vmem>>, %arg6: memref<8x4xf32, #tpu.memory_space<vmem>>) attributes {dimension_semantics = [#tpu.dimension_semantics<parallel>], iteration_bounds = array<i64: 1>, scalar_prefetch = 0 : i64, scratch_operands = 0 : i64, tpu.core_type = #tpu.core_type<tc>, window_params = [{transform_indices = @transform_0, window_bounds = array<i64: 8, 16>}, {pipeline_mode = #tpu.pipeline_mode<synchronous>, transform_indices = @transform_1, window_bounds = array<i64: 16, 64>}, {pipeline_mode = #tpu.pipeline_mode<synchronous>, transform_indices = @transform_2, window_bounds = array<i64: 1, 64>}, {pipeline_mode = #tpu.pipeline_mode<synchronous>, transform_indices = @transform_3, window_bounds = array<i64: 64, 4>}, {pipeline_mode = #tpu.pipeline_mode<synchronous>, transform_indices = @transform_4, window_bounds = array<i64: 1, 4>}, {transform_indices = @transform_5, window_bounds = array<i64: 8, 4>}]} {
    %c0 = arith.constant 0 : index
    %c0_0 = arith.constant 0 : index
    %0 = vector.load %arg1[%c0, %c0_0] : memref<8x16xf32, #tpu.memory_space<vmem>>, vector<8x16xf32>
    %c0_1 = arith.constant 0 : index
    %c0_2 = arith.constant 0 : index
    %1 = vector.load %arg2[%c0_1, %c0_2] : memref<16x64xf32, #tpu.memory_space<vmem>>, vector<16x64xf32>
    %cst = arith.constant dense<0.000000e+00> : vector<8x64xf32>
    %2 = tpu.matmul %0, %1, %cst {dimension_numbers = #tpu.dot_dimension_numbers<[1], [0], [0], [1], [0, 0, 1, 1], [], []>} : vector<8x16xf32>, vector<16x64xf32>, vector<8x64xf32> -> vector<8x64xf32>
    %c0_3 = arith.constant 0 : index
    %c0_4 = arith.constant 0 : index
    %3 = vector.load %arg3[%c0_3, %c0_4] : memref<1x64xf32, #tpu.memory_space<vmem>>, vector<1x64xf32>
    %4 = vector.broadcast %3 : vector<1x64xf32> to vector<8x64xf32>
    %5 = arith.addf %2, %4 : vector<8x64xf32>
    %cst_5 = arith.constant 0.000000e+00 : f32
    %6 = vector.broadcast %cst_5 : f32 to vector<8x64xf32>
    %7 = arith.maximumf %5, %6 : vector<8x64xf32>
    %c0_6 = arith.constant 0 : index
    %c0_7 = arith.constant 0 : index
    %8 = vector.load %arg4[%c0_6, %c0_7] : memref<64x4xf32, #tpu.memory_space<vmem>>, vector<64x4xf32>
    %cst_8 = arith.constant dense<0.000000e+00> : vector<8x4xf32>
    %9 = tpu.matmul %7, %8, %cst_8 {dimension_numbers = #tpu.dot_dimension_numbers<[1], [0], [0], [1], [0, 0, 1, 1], [], []>} : vector<8x64xf32>, vector<64x4xf32>, vector<8x4xf32> -> vector<8x4xf32>
    %c0_9 = arith.constant 0 : index
    %c0_10 = arith.constant 0 : index
    %10 = vector.load %arg5[%c0_9, %c0_10] : memref<1x4xf32, #tpu.memory_space<vmem>>, vector<1x4xf32>
    %11 = vector.broadcast %10 : vector<1x4xf32> to vector<8x4xf32>
    %12 = arith.addf %9, %11 : vector<8x4xf32>
    %c0_11 = arith.constant 0 : index
    %c0_12 = arith.constant 0 : index
    %13 = vector.load %arg6[%c0_11, %c0_12] : memref<8x4xf32, #tpu.memory_space<vmem>>, vector<8x4xf32>
    tpu.vector_store %arg6[%c0_11, %c0_12], %12 {strides = array<i32>} : memref<8x4xf32, #tpu.memory_space<vmem>>, vector<8x4xf32>,
    return
  }
  func.func @transform_0(%arg0: i32) -> (i32, i32) {
    %c0_i32 = arith.constant 0 : i32
    %c0_i32_0 = arith.constant 0 : i32
    return %arg0, %c0_i32 : i32, i32
  }
  func.func @transform_1(%arg0: i32) -> (i32, i32) {
    %c0_i32 = arith.constant 0 : i32
    %c0_i32_0 = arith.constant 0 : i32
    %c0_i32_1 = arith.constant 0 : i32
    return %c0_i32, %c0_i32_0 : i32, i32
  }
  func.func @transform_2(%arg0: i32) -> (i32, i32) {
    %c0_i32 = arith.constant 0 : i32
    %c0_i32_0 = arith.constant 0 : i32
    %c0_i32_1 = arith.constant 0 : i32
    return %c0_i32, %c0_i32_0 : i32, i32
  }
  func.func @transform_3(%arg0: i32) -> (i32, i32) {
    %c0_i32 = arith.constant 0 : i32
    %c0_i32_0 = arith.constant 0 : i32
    %c0_i32_1 = arith.constant 0 : i32
    return %c0_i32, %c0_i32_0 : i32, i32
  }
  func.func @transform_4(%arg0: i32) -> (i32, i32) {
    %c0_i32 = arith.constant 0 : i32
    %c0_i32_0 = arith.constant 0 : i32
    %c0_i32_1 = arith.constant 0 : i32
    return %c0_i32, %c0_i32_0 : i32, i32
  }
  func.func @transform_5(%arg0: i32) -> (i32, i32) {
    %c0_i32 = arith.constant 0 : i32
    %c0_i32_0 = arith.constant 0 : i32
    return %arg0, %c0_i32 : i32, i32
  }
}

</mosaic_0001>

<bundles_post_ra>
// kernel: qnetwork_forward.1
= control target key start
LH: loop header
LB: loop body
LE: loop exit
PB: predicated region body
PF: predicated region fallthrough
CT: control target
= control target key end

     0   :  { %v244_v0 = vmov 0.0   ;;  %vm245_vm0 = vmmov 0   ;;  %vm30_vm1 = vcmask 130048   ;;  %vm120_vm2 = vcmask 523264   ;;  %s320_s1 = inlined_call_operand.vmem [shape: f32[16,64], index: 1, kind: input, shape index: {}]   ;;  %s321_s0 = inlined_call_operand.vmem [shape: f32[8,16], index: 0, kind: input, shape index: {}]   ;;  %s322_s3 = inlined_call_operand.vmem [shape: f32[64,4], index: 3, kind: input, shape index: {}]   ;;  %s323_s2 = inlined_call_operand.vmem [shape: f32[1,64], index: 2, kind: input, shape index: {}]   ;;  %s324_s4 = inlined_call_operand.vmem [shape: f32[1,4], index: 4, kind: input, shape index: {}]   ;;  %s325_s5 = inlined_call_operand.vmem [shape: f32[8,4], index: 5, kind: output, shape index: {}]  }
   0x1   :  { %216 = vmatprep.subr.mxu0 %v244_v0  ;;  %v22_v1 = vld [vmem:[%s320_s1 + $0x8] sm:$0xff]  ;;  %v21_v2 = vld [vmem:[%s320_s1] sm:$0xff]  ;;  %220 = vmatprep.mubr.msk.f32.mxu0 %vm245_vm0, %v244_v0  ;;  %v112_v4 = vld [vmem:[%s322_s3 + $0x38] sm:$0xff]  ;;  %vm194_vm3 = vcmask 31744  }
   0x2   :  { %217 = vmatpush3.msra.mxu0 %v22_v1  ;;  %v20_v3 = vld [vmem:[%s321_s0] sm:$0xff]  ;;  %223 = vmatprep.subr.mxu1 %v244_v0  ;;  %v111_v5 = vld [vmem:[%s322_s3 + $0x30] sm:$0xff]  ;;  %v110_v6 = vld [vmem:[%s322_s3 + $0x28] sm:$0xff] }
   0x3   :  { %218 = vmatprep.subr.mxu0 %v244_v0  ;;  %224 = vmatpush3.msra.mxu1 %v112_v4  ;;  %v109_v7 = vld [vmem:[%s322_s3 + $0x20] sm:$0xff]  ;;  %v108_v8 = vld [vmem:[%s322_s3 + $0x18] sm:$0xff]  ;;  %v107_v9 = vld [vmem:[%s322_s3 + $0x10] sm:$0xff] }
   0x4   :  { %219 = vmatpush3.msra.mxu0 %v21_v2  ;;  %225 = vmatprep.subr.mxu1 %v244_v0  ;;  %v106_v10 = vld [vmem:[%s322_s3 + $0x8] sm:$0xff]  ;;  %v105_v11 = vld [vmem:[%s322_s3] sm:$0xff] }
   0x5   :  { %221 = vmatmul.mubr.msk.f32.vlgmr.msra.gmra.mxu0 %vm30_vm1, %v20_v3  ;;  %226 = vmatpush3.msra.mxu1 %v111_v5  ;;  %v200_v12 = vld [vmem:[%s323_s2] ss:$0 sm:$0xff] }
   0x6   :  { %227 = vmatprep.subr.mxu1 %v244_v0  ;;  %239 = vmatprep.mubr.msk.f32.mxu1 %vm245_vm0, %v244_v0  ;;  %v202_v17 = vld [vmem:[%s324_s4] ss:$0 sm:$0xff] }
   0x7   :  { %228 = vmatpush3.msra.mxu1 %v110_v6 }
   0x8   :  { %229 = vmatprep.subr.mxu1 %v244_v0 }
   0x9   :  { %230 = vmatpush3.msra.mxu1 %v109_v7 }
   0xa   :  { %231 = vmatprep.subr.mxu1 %v244_v0 }
   0xb   :  { %232 = vmatpush3.msra.mxu1 %v108_v8 }
   0xc   :  { %233 = vmatprep.subr.mxu1 %v244_v0 }
   0xd   :  { %234 = vmatpush3.msra.mxu1 %v107_v9 }
   0xe   :  { %235 = vmatprep.subr.mxu1 %v244_v0 }
   0xf   :  { %236 = vmatpush3.msra.mxu1 %v106_v10 }
  0x10   :  { %237 = vmatprep.subr.mxu1 %v244_v0 }
  0x11   :  { %238 = vmatpush3.msra.mxu1 %v105_v11 }
  0xc5   :  { %v100_v13 = vpop.f32.mrf.mxu0 }
  0xc6   :  { %v101_v14 = vadd.f32 %v200_v12, %v100_v13 }
  0xc7   :  { %v222_v15 = vpop.f32.mrf.mxu0 }
  0xc8   :  { %v104_v16 = vmax.f32 %v101_v14, 0.0 }
  0xca   :  { %240 = vmatmul.mubr.msk.f32.vlgmr.msra.gmra.mxu1 %vm120_vm2, %v104_v16 }
 0x18a   :  { %v190_v18 = vpop.f32.mrf.mxu1 }
 0x18b   :  { %v191_v19 = vadd.f32 %v202_v17, %v190_v18 }
 0x18c   :  { %v241_v20 = vpop.f32.mrf.mxu1 }
 0x18d   :  { %195 = vst.msk [vmem:[%s325_s5] sm:$0xff] %vm194_vm3, %v191_v19 }

</bundles_post_ra>
